<compile_context>
chip_gen: v5e
topology: v5e:2x2
jax: 0.10.0
libtpu: 0.0.40
codegen_flags: <defaults>
</compile_context>

<pallas_src>
import jax
import jax.numpy as jnp
from jax.experimental import pallas as pl
from jax.experimental.pallas import tpu as pltpu


def value_encoder_kernel(idx_ref, table_ref, out_ref):
    # idx_ref:   (gm, pack)        int32  `pack` token bin-indices per row
    # table_ref: (pack*V, pack*D)  f32    block-diagonal, pre-LayerNormed table
    # out_ref:   (gm, pack*D)      f32    `pack` normalized embeddings per row
    gm, pack = idx_ref.shape
    pv = table_ref.shape[0]
    V = pv // pack

    idx = idx_ref[...]                                       # (gm, pack) int32
    lane = jax.lax.broadcasted_iota(jnp.int32, (gm, pv), 1)  # column index

    # one_hot[r, p*V + v] = (idx[r, p] == v), built with iota + compares only
    # (no replicated-index input, no integer div/mod).  `pack` is small/static.
    one_hot = jnp.zeros((gm, pv), jnp.float32)
    for p in range(pack):
        in_slot = (lane >= p * V) & (lane < (p + 1) * V)
        hit = in_slot & (idx[:, p:p + 1] == (lane - p * V))
        one_hot = jnp.where(hit, 1.0, one_hot)

    # Gather: one-hot @ block-diagonal pre-normalized table.  Exactly one 1 per
    # V-segment -> an (essentially exact) f32 row gather on the MXU.
    out_ref[...] = jnp.dot(one_hot, table_ref[...],
                           preferred_element_type=jnp.float32)


def make_value_encoder(table, gamma, beta, *, eps=1e-5, tile_tokens=2048):
    """Precompute constants once; returns encode(x_idx:(B,S) int) -> (B,S,D) f32."""
    V, D = table.shape
    pack = 128 // D if (D < 128 and 128 % D == 0) else 1

    # ---- one-time host-side constant prep (hoisted out of the call path) ----
    t = table.astype(jnp.float32)
    mu = jnp.mean(t, axis=-1, keepdims=True)
    var = jnp.mean((t - mu) ** 2, axis=-1, keepdims=True)
    t_ln = (t - mu) * jax.lax.rsqrt(var + eps) \
        * gamma.astype(jnp.float32) + beta.astype(jnp.float32)
    # Block-diagonal layout: slot p's one-hot segment selects lanes [p*D,(p+1)*D).
    eye_p = jnp.eye(pack, dtype=jnp.float32)
    table_bd = jnp.einsum("pq,vd->pvqd", eye_p, t_ln).reshape(pack * V, pack * D)

    def encode(x_idx):
        B, S = x_idx.shape
        N = B * S
        quantum = 8 * pack                        # token granularity (8 sublanes)
        n_quanta = -(-N // quantum)
        tq = min(max(1, tile_tokens // quantum), n_quanta)
        if n_quanta >= 2:                         # >=2 grid steps -> v7x megacore
            tq = min(tq, -(-n_quanta // 2))
        tm = tq * quantum                         # tokens per grid step
        num_tiles = -(-N // tm)
        n_pad = num_tiles * tm
        gm = tm // pack                           # packed rows per grid step
        G = n_pad // pack                         # total packed rows

        idx = x_idx.reshape(-1).astype(jnp.int32)
        if n_pad != N:
            idx = jnp.pad(idx, (0, n_pad - N))    # pad with bin 0 (sliced off)
        idx = idx.reshape(G, pack)

        out_packed = pl.pallas_call(
            value_encoder_kernel,
            out_shape=jax.ShapeDtypeStruct((G, pack * D), jnp.float32),
            grid_spec=pltpu.PrefetchScalarGridSpec(
                num_scalar_prefetch=0,
                grid=(num_tiles,),
                in_specs=[
                    pl.BlockSpec((gm, pack), lambda i: (i, 0)),           # indices
                    pl.BlockSpec((pack * V, pack * D), lambda i: (0, 0)),  # table
                ],
                out_specs=pl.BlockSpec((gm, pack * D), lambda i: (i, 0)),
            ),
            compiler_params=pltpu.CompilerParams(
                dimension_semantics=("parallel",)),
        )(idx, table_bd)

        out = out_packed.reshape(n_pad, D)[:N]
        return out.reshape(B, S, D)

    return jax.jit(encode)


if __name__ == "__main__":
    # Small shapes consistent with the module: num_embeddings (bins)=16,
    # embedding_dim=32, batch=2, seq=8.
    num_embeddings = 16
    embedding_dim = 32
    padding_idx = 0
    batch, seq = 2, 8

    key = jax.random.PRNGKey(0)
    k_tab, k_idx = jax.random.split(key)

    # nn.Embedding ~ N(0,1); padding row zeroed; LayerNorm gamma=1, beta=0.
    table = jax.random.normal(k_tab, (num_embeddings, embedding_dim), jnp.float32)
    table = table.at[padding_idx].set(0.0)
    gamma = jnp.ones((embedding_dim,), jnp.float32)
    beta = jnp.zeros((embedding_dim,), jnp.float32)

    x = jax.random.randint(k_idx, (batch, seq), 0, num_embeddings, jnp.int32)

    encode = make_value_encoder(table, gamma, beta)
    out = jax.block_until_ready(encode(x))
    assert out.shape == (batch, seq, embedding_dim)

    # Pure-f32 torch semantics: embedding lookup then LayerNorm.  The kernel's
    # only deviation is the MXU's f32 matmul pass decomposition on the gather
    # (observed error is typically far below the tolerance used here).
    emb = table[x]
    mu = emb.mean(-1, keepdims=True)
    var = ((emb - mu) ** 2).mean(-1, keepdims=True)
    ref = (emb - mu) / jnp.sqrt(var + 1e-5) * gamma + beta
    err = float(jnp.max(jnp.abs(out - ref)))
    assert jnp.allclose(out, ref, atol=2e-2, rtol=0.0), err

    print("KERNEL_OK")
</pallas_src>

<mosaic_0001>
module attributes {stable_mosaic.version = 11 : i64} {
  func.func @value_encoder_kernel(%arg0: i32, %arg1: memref<8x4xi32, #tpu.memory_space<vmem>>, %arg2: memref<64x128xf32, #tpu.memory_space<vmem>>, %arg3: memref<8x128xf32, #tpu.memory_space<vmem>>) attributes {dimension_semantics = [#tpu.dimension_semantics<parallel>], iteration_bounds = array<i64: 1>, scalar_prefetch = 0 : i64, scratch_operands = 0 : i64, tpu.core_type = #tpu.core_type<tc>, window_params = [{transform_indices = @transform_0, window_bounds = array<i64: 8, 4>}, {pipeline_mode = #tpu.pipeline_mode<synchronous>, transform_indices = @transform_1, window_bounds = array<i64: 64, 128>}, {transform_indices = @transform_2, window_bounds = array<i64: 8, 128>}]} {
    %c0 = arith.constant 0 : index
    %c0_0 = arith.constant 0 : index
    %0 = vector.load %arg1[%c0, %c0_0] : memref<8x4xi32, #tpu.memory_space<vmem>>, vector<8x4xi32>
    %1 = tpu.iota {dimensions = array<i32: 1>} : vector<8x64xi32>
    %cst = arith.constant 0.000000e+00 : f32
    %2 = vector.broadcast %cst : f32 to vector<8x64xf32>
    %c0_i32 = arith.constant 0 : i32
    %3 = vector.broadcast %c0_i32 : i32 to vector<8x64xi32>
    %4 = arith.cmpi sge, %1, %3 : vector<8x64xi32>
    %c16_i32 = arith.constant 16 : i32
    %5 = vector.broadcast %c16_i32 : i32 to vector<8x64xi32>
    %6 = arith.cmpi slt, %1, %5 : vector<8x64xi32>
    %7 = arith.andi %4, %6 : vector<8x64xi1>
    %8 = vector.extract_strided_slice %0 {offsets = [0, 0], sizes = [8, 1], strides = [1, 1]} : vector<8x4xi32> to vector<8x1xi32>
    %c0_i32_1 = arith.constant 0 : i32
    %9 = vector.broadcast %c0_i32_1 : i32 to vector<8x64xi32>
    %10 = arith.subi %1, %9 : vector<8x64xi32>
    %11 = vector.broadcast %8 : vector<8x1xi32> to vector<8x64xi32>
    %12 = arith.cmpi eq, %11, %10 : vector<8x64xi32>
    %13 = arith.andi %7, %12 : vector<8x64xi1>
    %cst_2 = arith.constant 1.000000e+00 : f32
    %14 = vector.broadcast %cst_2 : f32 to vector<8x64xf32>
    %15 = arith.select %13, %14, %2 : vector<8x64xi1>, vector<8x64xf32>
    %c16_i32_3 = arith.constant 16 : i32
    %16 = vector.broadcast %c16_i32_3 : i32 to vector<8x64xi32>
    %17 = arith.cmpi sge, %1, %16 : vector<8x64xi32>
    %c32_i32 = arith.constant 32 : i32
    %18 = vector.broadcast %c32_i32 : i32 to vector<8x64xi32>
    %19 = arith.cmpi slt, %1, %18 : vector<8x64xi32>
    %20 = arith.andi %17, %19 : vector<8x64xi1>
    %21 = vector.extract_strided_slice %0 {offsets = [0, 1], sizes = [8, 1], strides = [1, 1]} : vector<8x4xi32> to vector<8x1xi32>
    %c16_i32_4 = arith.constant 16 : i32
    %22 = vector.broadcast %c16_i32_4 : i32 to vector<8x64xi32>
    %23 = arith.subi %1, %22 : vector<8x64xi32>
    %24 = vector.broadcast %21 : vector<8x1xi32> to vector<8x64xi32>
    %25 = arith.cmpi eq, %24, %23 : vector<8x64xi32>
    %26 = arith.andi %20, %25 : vector<8x64xi1>
    %cst_5 = arith.constant 1.000000e+00 : f32
    %27 = vector.broadcast %cst_5 : f32 to vector<8x64xf32>
    %28 = arith.select %26, %27, %15 : vector<8x64xi1>, vector<8x64xf32>
    %c32_i32_6 = arith.constant 32 : i32
    %29 = vector.broadcast %c32_i32_6 : i32 to vector<8x64xi32>
    %30 = arith.cmpi sge, %1, %29 : vector<8x64xi32>
    %c48_i32 = arith.constant 48 : i32
    %31 = vector.broadcast %c48_i32 : i32 to vector<8x64xi32>
    %32 = arith.cmpi slt, %1, %31 : vector<8x64xi32>
    %33 = arith.andi %30, %32 : vector<8x64xi1>
    %34 = vector.extract_strided_slice %0 {offsets = [0, 2], sizes = [8, 1], strides = [1, 1]} : vector<8x4xi32> to vector<8x1xi32>
    %c32_i32_7 = arith.constant 32 : i32
    %35 = vector.broadcast %c32_i32_7 : i32 to vector<8x64xi32>
    %36 = arith.subi %1, %35 : vector<8x64xi32>
    %37 = vector.broadcast %34 : vector<8x1xi32> to vector<8x64xi32>
    %38 = arith.cmpi eq, %37, %36 : vector<8x64xi32>
    %39 = arith.andi %33, %38 : vector<8x64xi1>
    %cst_8 = arith.constant 1.000000e+00 : f32
    %40 = vector.broadcast %cst_8 : f32 to vector<8x64xf32>
    %41 = arith.select %39, %40, %28 : vector<8x64xi1>, vector<8x64xf32>
    %c48_i32_9 = arith.constant 48 : i32
    %42 = vector.broadcast %c48_i32_9 : i32 to vector<8x64xi32>
    %43 = arith.cmpi sge, %1, %42 : vector<8x64xi32>
    %c64_i32 = arith.constant 64 : i32
    %44 = vector.broadcast %c64_i32 : i32 to vector<8x64xi32>
    %45 = arith.cmpi slt, %1, %44 : vector<8x64xi32>
    %46 = arith.andi %43, %45 : vector<8x64xi1>
    %47 = vector.extract_strided_slice %0 {offsets = [0, 3], sizes = [8, 1], strides = [1, 1]} : vector<8x4xi32> to vector<8x1xi32>
    %c48_i32_10 = arith.constant 48 : i32
    %48 = vector.broadcast %c48_i32_10 : i32 to vector<8x64xi32>
    %49 = arith.subi %1, %48 : vector<8x64xi32>
    %50 = vector.broadcast %47 : vector<8x1xi32> to vector<8x64xi32>
    %51 = arith.cmpi eq, %50, %49 : vector<8x64xi32>
    %52 = arith.andi %46, %51 : vector<8x64xi1>
    %cst_11 = arith.constant 1.000000e+00 : f32
    %53 = vector.broadcast %cst_11 : f32 to vector<8x64xf32>
    %54 = arith.select %52, %53, %41 : vector<8x64xi1>, vector<8x64xf32>
    %c0_12 = arith.constant 0 : index
    %c0_13 = arith.constant 0 : index
    %55 = vector.load %arg2[%c0_12, %c0_13] : memref<64x128xf32, #tpu.memory_space<vmem>>, vector<64x128xf32>
    %cst_14 = arith.constant dense<0.000000e+00> : vector<8x128xf32>
    %56 = tpu.matmul %54, %55, %cst_14 {dimension_numbers = #tpu.dot_dimension_numbers<[1], [0], [0], [1], [0, 0, 1, 1], [], []>} : vector<8x64xf32>, vector<64x128xf32>, vector<8x128xf32> -> vector<8x128xf32>
    %c0_15 = arith.constant 0 : index
    %c0_16 = arith.constant 0 : index
    %57 = vector.load %arg3[%c0_15, %c0_16] : memref<8x128xf32, #tpu.memory_space<vmem>>, vector<8x128xf32>
    tpu.vector_store %arg3[%c0_15, %c0_16], %56 {strides = array<i32>} : memref<8x128xf32, #tpu.memory_space<vmem>>, vector<8x128xf32>,
    return
  }
  func.func @transform_0(%arg0: i32) -> (i32, i32) {
    %c0_i32 = arith.constant 0 : i32
    %c0_i32_0 = arith.constant 0 : i32
    return %arg0, %c0_i32 : i32, i32
  }
  func.func @transform_1(%arg0: i32) -> (i32, i32) {
    %c0_i32 = arith.constant 0 : i32
    %c0_i32_0 = arith.constant 0 : i32
    %c0_i32_1 = arith.constant 0 : i32
    return %c0_i32, %c0_i32_0 : i32, i32
  }
  func.func @transform_2(%arg0: i32) -> (i32, i32) {
    %c0_i32 = arith.constant 0 : i32
    %c0_i32_0 = arith.constant 0 : i32
    return %arg0, %c0_i32 : i32, i32
  }
}

</mosaic_0001>

<bundles_post_ra>
// kernel: encode.1
= control target key start
LH: loop header
LB: loop body
LE: loop exit
PB: predicated region body
PF: predicated region fallthrough
CT: control target
= control target key end

     0   :  { %7 = vsyncpa [#allocation3], 0  ;;  %s150_s12 = smov [#allocation2]   ;;  %s151_s14 = smov 128   ;;  %s182_s0 = inlined_call_operand.vmem [shape: s32[8,4], index: 0, kind: input, shape index: {}]   ;;  %s183_s1 = inlined_call_operand.hbm [shape: f32[64,128], index: 1, kind: input, shape index: {}]   ;;  %s184_s2 = inlined_call_operand.vmem [shape: f32[8,128], index: 2, kind: output, shape index: {}]  }
   0x1   :  { %s14_s11 = sshll.u32 %s183_s1, 4  ;;  %s16_s13 = sshll.u32 %s150_s12, 4  ;;  %s15_s11 = int_to_ptr.hbm [resolvable:$true] %s14_s11  ;;  %s17_s13 = int_to_ptr.vmem [resolvable:$true] %s16_s13 }
   0x2   :  { %s152_s15 = smov 8  }
   0x3   :  { %22 = dma.hbm_to_vmem [thread:$0]  %s15_s11, 1024, %s17_s13, [#allocation3], %s151_s14, %s151_s14, %s152_s15  }
   0x4   :  { %148 = dma.done.wait [#allocation3], 1024  }
   0x5   :  { %149 = vsyncadd [#allocation3], 4294966272  ;;  %v153_v0 = vmov 0   ;;  %v154_v1 = vmov 2   ;;  %v27_v2 = vld [vmem:[%s182_s0] sm:$0xff]  ;;  %v76_v3 = vld [vmem:[#allocation2 + $0x38] sm:$0xff]  ;;  %v28_v13 = vlaneseq }
   0x6   :  { %119 = vset.pattern.permute.xlu0 %v153_v0  ;;  %121 = vset.pattern.permute.xlu1 %v154_v1  ;;  %v155_v4 = vmov 1   ;;  %v156_v5 = vmov 3   ;;  %v75_v6 = vld [vmem:[#allocation2 + $0x30] sm:$0xff]  ;;  %v74_v7 = vld [vmem:[#allocation2 + $0x28] sm:$0xff]  ;;  %v73_v8 = vld [vmem:[#allocation2 + $0x20] sm:$0xff]  ;;  %v157_v22 = vmov 0.0  }
   0x7   :  { %34 = vperm.xlu0 %119, %v27_v2   ;;  %54 = vperm.xlu1 %121, %v27_v2   ;;  %v72_v9 = vld [vmem:[#allocation2 + $0x18] sm:$0xff]  ;;  %v71_v10 = vld [vmem:[#allocation2 + $0x10] sm:$0xff]  ;;  %v70_v11 = vld [vmem:[#allocation2 + $0x8] sm:$0xff]  ;;  %v29_v14 = vand.u32 127, %v28_v13 }
   0x8   :  { %89 = vmatpush.msra.mxu0 %v76_v3  ;;  %v69_v12 = vld [vmem:[#allocation2] sm:$0xff] }
   0x9   :  { %vm49_vm0 = vcmp.ge.s32.totalorder %v29_v14, 32  ;;  %vm50_vm1 = vcmp.lt.s32.totalorder %v29_v14, 48  ;;  %v108_v17 = vadd.s32 4294967264, %v29_v14  ;;  %vm39_vm2 = vcmp.ge.s32.totalorder %v29_v14, 16 }
   0xa   :  { %90 = vmatpush.msra.mxu0 %v75_v6  ;;  %vm40_vm3 = vcmp.lt.s32.totalorder %v29_v14, 32  ;;  %vm31_vm4 = vcmp.lt.s32.totalorder %v29_v14, 16  ;;  %vm51_vm6 = vmand %vm49_vm0, %vm50_vm1  ;;  %v107_v18 = vadd.s32 4294967280, %v29_v14  ;;  %vm59_vm7 = vcmp.ge.s32.totalorder %v29_v14, 48 }
   0xb   :  { %vm60_vm8 = vcmp.lt.s32.totalorder %v29_v14, 64  ;;  %v109_v19 = vadd.s32 4294967248, %v29_v14  ;;  %vm41_vm10 = vmand %vm39_vm2, %vm40_vm3  ;;  %vm77_vm2 = vcmask 523264  }
   0xc   :  { %91 = vmatpush.msra.mxu0 %v74_v7  ;;  %vm61_vm12 = vmand %vm59_vm7, %vm60_vm8 }
   0xe   :  { %92 = vmatpush.msra.mxu0 %v73_v8 }
   0xf   :  { %120 = vset.pattern.permute.xlu0 %v155_v4  ;;  %122 = vset.pattern.permute.xlu1 %v156_v5 }
  0x10   :  { %44 = vperm.xlu0 %120, %v27_v2   ;;  %64 = vperm.xlu1 %122, %v27_v2  }
  0x11   :  { %93 = vmatpush.msra.mxu0 %v72_v9 }
  0x13   :  { %94 = vmatpush.msra.mxu0 %v71_v10 }
  0x15   :  { %95 = vmatpush.msra.mxu0 %v70_v11 }
  0x17   :  { %96 = vmatpush.msra.mxu0 %v69_v12 }
  0x18   :  { %123 = vset.pattern.permute.xlu0 %v156_v5 }
  0x79   :  { %v35_v15 = vpop.permute.xlu0 %34  ;;  %v55_v16 = vpop.permute.xlu1 %54 }
  0x7a   :  { %vm36_vm5 = vcmp.eq.s32.totalorder %v35_v15, %v29_v14  ;;  %vm56_vm9 = vcmp.eq.s32.totalorder %v55_v16, %v108_v17 }
  0x7b   :  { %vm37_vm11 = vmand %vm31_vm4, %vm36_vm5 }
  0x7c   :  { %vm57_vm13 = vmand %vm51_vm6, %vm56_vm9  ;;  %v38_v23 = vsel %vm37_vm11, 1.0, %v157_v22 }
  0x82   :  { %v45_v20 = vpop.permute.xlu0 %44  ;;  %v65_v21 = vpop.permute.xlu1 %64 }
  0x83   :  { %vm46_vm14 = vcmp.eq.s32.totalorder %v45_v20, %v107_v18  ;;  %vm66_vm15 = vcmp.eq.s32.totalorder %v65_v21, %v109_v19 }
  0x84   :  { %vm47_vm0 = vmand %vm41_vm10, %vm46_vm14 }
  0x85   :  { %v48_v24 = vsel %vm47_vm0, 1.0, %v38_v23  ;;  %vm67_vm1 = vmand %vm61_vm12, %vm66_vm15 }
  0x86   :  { %v58_v25 = vsel %vm57_vm13, 1.0, %v48_v24 }
  0x87   :  { %v68_v26 = vsel %vm67_vm1, 1.0, %v58_v25 }
  0x88   :  { %110 = vmatmul.msk.f32.vlgmr.msra.gmra.mxu0 %vm77_vm2, %v68_v26 }
 0x105   :  { %v98_v27 = vpop.f32.mrf.mxu0 }
 0x106   :  { %101 = vst [vmem:[%s184_s2] sm:$0xff] %v98_v27 }
 0x107   :  { %106 = vsyncpa [#allocation3], 1 }

</bundles_post_ra>
